<compile_context>
chip_gen: v5e
topology: v5e:2x2
jax: 0.10.0
libtpu: 0.0.40
codegen_flags: <defaults>
</compile_context>

<pallas_src>
import functools
import numpy as np

import jax
import jax.numpy as jnp
from jax.experimental import pallas as pl
from jax.experimental.pallas import tpu as pltpu

# ----------------------------- small synthetic config -----------------------
VOCAB = 256
N_EMBD = 64
N_HEAD = 4
HEAD_DIM = N_EMBD // N_HEAD
N_LAYER = 2
N_INNER = 4 * N_EMBD
N_POSITIONS = 64
LN_EPS = 1e-5
BITS = 4
GROUPSIZE = 32   # TODO(synk): original quantize() uses groupsize=128; reduced for the tiny synthetic hidden size.
QKV_PAD = 128    # c_attn real output is n_embd + 2*head_dim = 96 -> weight padded to a lane-dense 128.


# ----------------------------- tiling helpers --------------------------------
def _largest_divisor_leq(n, cap):
    cap = min(n, cap)
    for d in range(cap, 0, -1):
        if n % d == 0:
            return d
    return 1


def _pick_n_tile(n, cap=512):
    """Largest multiple of 128 dividing n (<= cap); else the full dim."""
    best = None
    t = 128
    while t <= min(n, cap):
        if n % t == 0:
            best = t
        t += 128
    return best if best is not None else n


# ----------------------------- fused GPTQ linear ------------------------------
def _gptq_fused_kernel(*refs, has_ln, has_res, out_ln, split, activation,
                       gpc, gs, n_kc, eps):
    """[LayerNorm ->] GPTQ dequant-matmul -> bias [-> gelu] [-> +residual] [-> LN].

    grid = (M tiles, N tiles, K chunks).  Per K chunk the packed 4-bit weights
    are dequantized once on the VPU into a bf16 staging buffer and consumed by
    ONE deep MXU contraction.
    """
    i = 0
    x_ref = refs[i]; i += 1
    if has_ln:
        g_ref, b_ref = refs[i], refs[i + 1]; i += 2
    qw_ref, sc_ref, zr_ref, bias_ref = refs[i:i + 4]; i += 4
    if has_res:
        res_ref = refs[i]; i += 1
    if out_ln:
        og_ref, ob_ref = refs[i], refs[i + 1]; i += 2
    n_out = 1 if split is None else 2
    o_refs = refs[i:i + n_out]; i += n_out
    acc_ref = refs[i]; w_scr = refs[i + 1]; i += 2
    hn_ref = refs[i] if has_ln else None

    k = pl.program_id(2)
    gs_half = gs // 2
    tk = gpc * gs

    @pl.when(k == 0)
    def _init():
        acc_ref[...] = jnp.zeros_like(acc_ref)
        if has_ln:
            # LN needs the full K row; computed once per (m, n) tile at k==0
            # (no cross-tile dependency, safe under megacore sharding).
            x = x_ref[...].astype(jnp.float32)
            mu = jnp.mean(x, axis=-1, keepdims=True)
            xc = x - mu
            var = jnp.mean(xc * xc, axis=-1, keepdims=True)
            hn = (xc * jax.lax.rsqrt(var + eps) * g_ref[...]
                  + b_ref[...]).astype(jnp.bfloat16)
            for c in range(n_kc):               # static chunk split of the LN'd input
                hn_ref[c] = hn[:, c * tk:(c + 1) * tk]

    # current K chunk of the (possibly LayerNorm'd) input, bf16 [tm, tk]
    x_blk = hn_ref[k] if has_ln else x_ref[...].astype(jnp.bfloat16)

    # --- dequantize the full [tk, tn] chunk once (VPU), stage as bf16 ---
    for g in range(gpc):                        # static loop over groups in this chunk
        pw = qw_ref[g].astype(jnp.int32) & 0xFF           # [gs/2, tn] unsigned bytes
        lo = (pw & 0xF).astype(jnp.float32)               # k in [0, gs/2)
        hi = (pw >> 4).astype(jnp.float32)                # k in [gs/2, gs)
        s = sc_ref[g]                                     # [1, tn]
        z = zr_ref[g]                                     # [1, tn]
        w_scr[g * gs:g * gs + gs_half, :] = ((lo - z) * s).astype(jnp.bfloat16)
        w_scr[g * gs + gs_half:(g + 1) * gs, :] = ((hi - z) * s).astype(jnp.bfloat16)

    # --- one deep MXU contraction per chunk ---
    acc_ref[...] += jnp.dot(x_blk, w_scr[...], preferred_element_type=jnp.float32)

    @pl.when(k == pl.num_programs(2) - 1)
    def _finalize():
        out = acc_ref[...] + bias_ref[...]
        if activation == "gelu_tanh":
            out = 0.5 * out * (1.0 + jnp.tanh(
                0.7978845608028654 * (out + 0.044715 * out * out * out)))
        if has_res:
            out = out + res_ref[...].astype(jnp.float32)
        if out_ln:                              # fused final LayerNorm (lm_head prologue)
            mu = jnp.mean(out, axis=-1, keepdims=True)
            oc = out - mu
            var = jnp.mean(oc * oc, axis=-1, keepdims=True)
            out = oc * jax.lax.rsqrt(var + eps) * og_ref[...] + ob_ref[...]
        if split is None:
            o_refs[0][...] = out.astype(o_refs[0].dtype)
        else:                                   # split q / kv outputs of c_attn
            n0, n1 = split
            o_refs[0][...] = out[:, :n0].astype(o_refs[0].dtype)
            o_refs[1][...] = out[:, n0:n0 + n1].astype(o_refs[1].dtype)


def gptq_linear(x, qp, *, ln_params=None, residual=None, activation=None,
                out_ln_params=None, split_sizes=None, out_dtype=jnp.bfloat16):
    M, K = x.shape
    G, gs_half, N = qp["qweight"].shape
    gs = 2 * gs_half
    assert K == G * gs

    gpc = _largest_divisor_leq(G, max(1, 512 // gs))     # groups per chunk, tk <= 512
    n_kc = G // gpc
    tk = gpc * gs
    tn = _pick_n_tile(N, 512)                            # lane-dense N tiles
    n_nt = N // tn
    tm = _largest_divisor_leq(M, 256)                    # bound LN-row scratch (v7x VMEM)
    n_mt = M // tm

    has_ln = ln_params is not None
    has_res = residual is not None
    out_ln = out_ln_params is not None
    if split_sizes is not None or out_ln:
        # TODO(synk): at real sizes (n_nt > 1) these fusions need a standalone pass.
        assert n_nt == 1, "split/out_ln fusion requires the full output row in one N tile"

    inputs, in_specs = [x], []
    if has_ln:
        # LN needs the full K row -> resident (tm, K) block, chunked into a bf16 scratch.
        in_specs.append(pl.BlockSpec((tm, K), lambda m, n, k: (m, 0)))
        inputs += list(ln_params)
        in_specs += [pl.BlockSpec((1, K), lambda m, n, k: (0, 0))] * 2
    else:
        in_specs.append(pl.BlockSpec((tm, tk), lambda m, n, k: (m, k)))

    inputs += [qp["qweight"], qp["scales"], qp["zeros"], qp["bias"]]
    qw_map = lambda m, n, k: (k, 0, n)
    if n_kc >= 3:
        # deepen weight pipelining at decode-style shapes (exposed DMA latency)
        qw_spec = pl.BlockSpec((gpc, gs_half, tn), qw_map, pipeline_mode=pl.Buffered(3))
    else:
        qw_spec = pl.BlockSpec((gpc, gs_half, tn), qw_map)
    in_specs += [
        qw_spec,                                                      # packed int8 nibbles
        pl.BlockSpec((gpc, 1, tn), lambda m, n, k: (k, 0, n)),        # scales
        pl.BlockSpec((gpc, 1, tn), lambda m, n, k: (k, 0, n)),        # zeros
        pl.BlockSpec((1, tn), lambda m, n, k: (0, n)),                # bias
    ]
    if has_res:
        inputs.append(residual)
        in_specs.append(pl.BlockSpec((tm, tn), lambda m, n, k: (m, n)))
    if out_ln:
        inputs += list(out_ln_params)
        in_specs += [pl.BlockSpec((1, N), lambda m, n, k: (0, 0))] * 2

    if split_sizes is None:
        out_shape = jax.ShapeDtypeStruct((M, N), out_dtype)
        out_specs = pl.BlockSpec((tm, tn), lambda m, n, k: (m, n))
    else:
        n0, n1 = split_sizes
        out_shape = (jax.ShapeDtypeStruct((M, n0), out_dtype),
                     jax.ShapeDtypeStruct((M, n1), out_dtype))
        out_specs = (pl.BlockSpec((tm, n0), lambda m, n, k: (m, 0)),
                     pl.BlockSpec((tm, n1), lambda m, n, k: (m, 0)))

    scratch = [pltpu.VMEM((tm, tn), jnp.float32),         # f32 accumulator
               pltpu.VMEM((tk, tn), jnp.bfloat16)]        # dequantized-weight staging
    if has_ln:
        scratch.append(pltpu.VMEM((n_kc, tm, tk), jnp.bfloat16))   # LN'd row, bf16, chunked

    kernel = functools.partial(
        _gptq_fused_kernel, has_ln=has_ln, has_res=has_res, out_ln=out_ln,
        split=split_sizes, activation=activation, gpc=gpc, gs=gs, n_kc=n_kc, eps=LN_EPS)

    return pl.pallas_call(
        kernel,
        grid=(n_mt, n_nt, n_kc),
        out_shape=out_shape,
        in_specs=in_specs,
        out_specs=out_specs,
        scratch_shapes=scratch,
        compiler_params=pltpu.CompilerParams(
            dimension_semantics=("parallel", "parallel", "arbitrary")),
    )(*inputs)


# ----------------------------- multi-query attention --------------------------
def _mqa_attn_kernel(q_ref, kv_ref, mask_ref, o_ref, q_scr, *, scale, n_head, head_dim):
    """Causal MQA for one batch row.

    Heads are gathered into sublanes ([Sq, H*Dh] -> [H*Sq, Dh]) so the shared
    K/V tile is consumed by ONE score matmul and ONE PV matmul per batch row.
    """
    kv = kv_ref[...]                                   # bf16 [Skv, 2*Dh]
    kb = kv[:, :head_dim]
    vb = kv[:, head_dim:]
    sq = q_ref.shape[0]

    for h in range(n_head):                            # static head -> sublane gather
        q_scr[h * sq:(h + 1) * sq, :] = q_ref[:, h * head_dim:(h + 1) * head_dim]

    s = jax.lax.dot_general(q_scr[...], kb, (((1,), (1,)), ((), ())),
                            preferred_element_type=jnp.float32)       # [H*Sq, Skv]
    s = s * scale + mask_ref[...]                       # additive causal mask (resident)
    m = jnp.max(s, axis=-1, keepdims=True)
    p = jnp.exp(s - m)
    p = p * pl.reciprocal(jnp.sum(p, axis=-1, keepdims=True), approx=True)
    o = jnp.dot(p.astype(jnp.bfloat16), vb,
                preferred_element_type=jnp.float32)                    # [H*Sq, Dh]
    for h in range(n_head):                            # scatter back to [Sq, H*Dh]
        o_ref[:, h * head_dim:(h + 1) * head_dim] = \
            o[h * sq:(h + 1) * sq, :].astype(o_ref.dtype)


def mqa_attention(q, kv):
    # TODO(synk): add flash-style KV tiling + online softmax for long sequences.
    B, S, _ = q.shape
    Skv = kv.shape[1]
    qi = jnp.arange(S)[:, None]
    kj = jnp.arange(Skv)[None, :]
    mask2d = jnp.where(kj <= qi + (Skv - S), 0.0, -1e30).astype(jnp.float32)
    mask = jnp.broadcast_to(mask2d[None], (N_HEAD, S, Skv)).reshape(N_HEAD * S, Skv)

    kernel = functools.partial(_mqa_attn_kernel, scale=1.0 / (HEAD_DIM ** 0.5),
                               n_head=N_HEAD, head_dim=HEAD_DIM)
    return pl.pallas_call(
        kernel,
        grid=(B,),
        out_shape=jax.ShapeDtypeStruct((B, S, N_EMBD), jnp.bfloat16),
        in_specs=[
            pl.BlockSpec((pl.Squeezed(), S, N_EMBD), lambda b: (b, 0, 0)),
            pl.BlockSpec((pl.Squeezed(), Skv, 2 * HEAD_DIM), lambda b: (b, 0, 0)),
            pl.BlockSpec((N_HEAD * S, Skv), lambda b: (0, 0)),
        ],
        out_specs=pl.BlockSpec((pl.Squeezed(), S, N_EMBD), lambda b: (b, 0, 0)),
        scratch_shapes=[pltpu.VMEM((N_HEAD * S, HEAD_DIM), jnp.bfloat16)],
        compiler_params=pltpu.CompilerParams(dimension_semantics=("parallel",)),
    )(q, kv, mask)


# ----------------------------- tied lm_head (LN hoisted) ----------------------
def _lm_head_kernel(h_ref, w_ref, o_ref):
    # input h is already ln_f-normalized (fused into the last mlp_proj);
    # weight is the pre-transposed bf16 [D, V] wte -> pure MXU/DMA kernel.
    o_ref[...] = jnp.dot(h_ref[...], w_ref[...], preferred_element_type=jnp.float32)


def lm_head(h, wte_t):
    M, D = h.shape
    V = wte_t.shape[1]
    tv = _pick_n_tile(V, 512)
    return pl.pallas_call(
        _lm_head_kernel,
        grid=(V // tv,),
        out_shape=jax.ShapeDtypeStruct((M, V), jnp.float32),
        in_specs=[
            pl.BlockSpec((M, D), lambda v: (0, 0)),
            pl.BlockSpec((D, tv), lambda v: (0, v)),
        ],
        out_specs=pl.BlockSpec((M, tv), lambda v: (0, v)),
        compiler_params=pltpu.CompilerParams(dimension_semantics=("parallel",)),
    )(h, wte_t)


# ----------------------------- parameter construction ------------------------
def make_quant_linear(key, in_features, out_features, groupsize=GROUPSIZE, pad_out_to=None):
    assert in_features % groupsize == 0 and groupsize % 2 == 0
    G = in_features // groupsize
    N = out_features if pad_out_to is None else pad_out_to
    k1, k2, k3, k4 = jax.random.split(key, 4)
    q = jax.random.randint(k1, (G, groupsize, N), 0, 2 ** BITS, dtype=jnp.int32)
    # pack 2 nibbles per int8: low nibble = first half of the group, high = second half
    packed = q[:, :groupsize // 2, :] + 16 * q[:, groupsize // 2:, :]      # 0..255
    qweight = jnp.where(packed >= 128, packed - 256, packed).astype(jnp.int8)
    scales = jax.random.uniform(k2, (G, 1, N), jnp.float32, 0.005, 0.02)
    zeros = jax.random.randint(k3, (G, 1, N), 0, 2 ** BITS,
                               dtype=jnp.int32).astype(jnp.float32)
    bias = 0.01 * jax.random.normal(k4, (1, N), jnp.float32)
    if N != out_features:
        valid = (jnp.arange(N) < out_features).astype(jnp.float32)
        scales = scales * valid          # padded output channels dequantize to exactly 0
        bias = bias * valid
    return dict(qweight=qweight, scales=scales, zeros=zeros, bias=bias)


def init_params(key):
    keys = jax.random.split(key, 4 + N_LAYER)
    wte = 0.02 * jax.random.normal(keys[0], (VOCAB, N_EMBD), jnp.float32)
    wpe = 0.02 * jax.random.normal(keys[1], (N_POSITIONS, N_EMBD), jnp.float32)
    layers = []
    for i in range(N_LAYER):
        lk = jax.random.split(keys[4 + i], 8)
        layers.append(dict(
            ln1_g=1.0 + 0.1 * jax.random.normal(lk[4], (1, N_EMBD), jnp.float32),
            ln1_b=0.1 * jax.random.normal(lk[5], (1, N_EMBD), jnp.float32),
            ln2_g=1.0 + 0.1 * jax.random.normal(lk[6], (1, N_EMBD), jnp.float32),
            ln2_b=0.1 * jax.random.normal(lk[7], (1, N_EMBD), jnp.float32),
            c_attn=make_quant_linear(lk[0], N_EMBD, N_EMBD + 2 * HEAD_DIM,
                                     pad_out_to=QKV_PAD),
            attn_proj=make_quant_linear(lk[1], N_EMBD, N_EMBD),
            c_fc=make_quant_linear(lk[2], N_EMBD, N_INNER),
            mlp_proj=make_quant_linear(lk[3], N_INNER, N_EMBD),
        ))
    return dict(
        wte=wte, wpe=wpe, layers=layers,
        lnf_g=1.0 + 0.1 * jax.random.normal(keys[2], (1, N_EMBD), jnp.float32),
        lnf_b=0.1 * jax.random.normal(keys[3], (1, N_EMBD), jnp.float32),
        # lm_head is excluded from quantization and tied to wte; stored once pre-transposed
        # (one-time [D, V] bf16 copy, reused every forward -> no per-tile transposed-B dot).
        wte_t=wte.T.astype(jnp.bfloat16),
    )


# ----------------------------- model forward ---------------------------------
def gptq_bigcode_forward(params, x, past_key_values=None, **unused):
    """Mirrors GPTQBigCodeModel.forward: returns (logits, [(present,), ...])."""
    if past_key_values:
        past_key_values = [t[0] for t in past_key_values]
    else:
        past_key_values = None

    B, S = x.shape
    past_len = 0 if past_key_values is None else past_key_values[0].shape[1]
    positions = past_len + jnp.arange(S)
    h = params["wte"][x] + params["wpe"][positions][None, :, :]   # embedding gather (XLA glue)
    h = h.reshape(B * S, N_EMBD).astype(jnp.bfloat16)

    presents = []
    n_layers = len(params["layers"])
    for li, layer in enumerate(params["layers"]):
        # --- multi-query attention block (LN1 fused, q / kv emitted separately) ---
        q, kv_new = gptq_linear(h, layer["c_attn"],
                                ln_params=(layer["ln1_g"], layer["ln1_b"]),
                                split_sizes=(N_EMBD, 2 * HEAD_DIM))
        kv = kv_new.reshape(B, S, 2 * HEAD_DIM)
        if past_key_values is not None:
            kv = jnp.concatenate([past_key_values[li].astype(kv.dtype), kv], axis=1)
        presents.append(kv)
        attn = mqa_attention(q.reshape(B, S, N_EMBD), kv)             # [B, S, n_embd] bf16
        # residual add fused into attn_proj
        h = gptq_linear(attn.reshape(B * S, N_EMBD), layer["attn_proj"], residual=h)
        # --- MLP block (LN2 + gelu fused into c_fc, residual fused into proj) ---
        ff = gptq_linear(h, layer["c_fc"],
                         ln_params=(layer["ln2_g"], layer["ln2_b"]),
                         activation="gelu_tanh")
        is_last = li == n_layers - 1
        # final LayerNorm fused into the last mlp_proj (hoisted out of lm_head)
        h = gptq_linear(ff, layer["mlp_proj"], residual=h,
                        out_ln_params=(params["lnf_g"], params["lnf_b"]) if is_last else None)

    logits = lm_head(h, params["wte_t"])
    return logits.reshape(B, S, VOCAB), [(kv,) for kv in presents]


# ----------------------------- pure-jnp reference -----------------------------
def _dequant(p):
    G, gs_half, N = p["qweight"].shape
    pw = p["qweight"].astype(jnp.int32) & 0xFF
    lo = (pw & 0xF).astype(jnp.float32)
    hi = (pw >> 4).astype(jnp.float32)
    q = jnp.concatenate([lo, hi], axis=1)                 # [G, gs, N]
    return (p["scales"] * (q - p["zeros"])).reshape(G * 2 * gs_half, N)


def _ref_layernorm(x, g, b):
    mu = x.mean(-1, keepdims=True)
    var = ((x - mu) ** 2).mean(-1, keepdims=True)
    return (x - mu) / jnp.sqrt(var + LN_EPS) * g + b


def _ref_gelu(x):
    return 0.5 * x * (1.0 + jnp.tanh(0.7978845608028654 * (x + 0.044715 * x ** 3)))


def ref_forward(params, x):
    B, S = x.shape
    h = (params["wte"][x] + params["wpe"][jnp.arange(S)][None]).reshape(B * S, N_EMBD)
    for layer in params["layers"]:
        hn = _ref_layernorm(h, layer["ln1_g"], layer["ln1_b"])
        qkv = hn @ _dequant(layer["c_attn"]) + layer["c_attn"]["bias"]
        q = qkv[:, :N_EMBD].reshape(B, S, N_HEAD, HEAD_DIM).transpose(0, 2, 1, 3)
        kv = qkv[:, N_EMBD:N_EMBD + 2 * HEAD_DIM].reshape(B, S, 2 * HEAD_DIM)
        k, v = kv[..., :HEAD_DIM], kv[..., HEAD_DIM:]
        s = jnp.einsum('bhqd,bkd->bhqk', q, k) / (HEAD_DIM ** 0.5)
        s = jnp.where(jnp.tril(jnp.ones((S, S), bool)), s, -1e30)
        p = jax.nn.softmax(s, -1)
        attn = jnp.einsum('bhqk,bkd->bhqd', p, v).transpose(0, 2, 1, 3).reshape(B * S, N_EMBD)
        attn = attn @ _dequant(layer["attn_proj"]) + layer["attn_proj"]["bias"]
        h = h + attn
        hn = _ref_layernorm(h, layer["ln2_g"], layer["ln2_b"])
        ff = _ref_gelu(hn @ _dequant(layer["c_fc"]) + layer["c_fc"]["bias"])
        ff = ff @ _dequant(layer["mlp_proj"]) + layer["mlp_proj"]["bias"]
        h = h + ff
    h = _ref_layernorm(h, params["lnf_g"], params["lnf_b"])
    return (h @ params["wte"].T).reshape(B, S, VOCAB)


# ----------------------------- main -------------------------------------------
if __name__ == "__main__":
    key = jax.random.PRNGKey(0)
    pkey, xkey = jax.random.split(key)
    params = init_params(pkey)

    B, S = 2, 8
    input_ids = jax.random.randint(xkey, (B, S), 0, VOCAB)

    logits, presents = gptq_bigcode_forward(params, input_ids)
    logits = jax.block_until_ready(logits)
    for pkv in presents:
        jax.block_until_ready(pkv[0])

    assert logits.shape == (B, S, VOCAB)
    assert presents[0][0].shape == (B, S, 2 * HEAD_DIM)

    ref = ref_forward(params, input_ids)
    if not np.allclose(np.asarray(logits), np.asarray(ref), atol=5e-2, rtol=5e-2):
        err = float(np.max(np.abs(np.asarray(logits) - np.asarray(ref))))
        raise AssertionError(
            f"Pallas kernel output mismatch vs pure-JAX reference (max abs err {err})")

    print("KERNEL_OK")
</pallas_src>

<mosaic_0001>
module attributes {stable_mosaic.version = 11 : i64} {
  func.func @_gptq_fused_kernel(%arg0: i32, %arg1: i32, %arg2: i32, %arg3: memref<16x64xbf16, #tpu.memory_space<vmem>>, %arg4: memref<1x64xf32, #tpu.memory_space<vmem>>, %arg5: memref<1x64xf32, #tpu.memory_space<vmem>>, %arg6: memref<2x16x128xi8, #tpu.memory_space<vmem>>, %arg7: memref<2x1x128xf32, #tpu.memory_space<vmem>>, %arg8: memref<2x1x128xf32, #tpu.memory_space<vmem>>, %arg9: memref<1x128xf32, #tpu.memory_space<vmem>>, %arg10: memref<16x64xbf16, #tpu.memory_space<vmem>>, %arg11: memref<16x32xbf16, #tpu.memory_space<vmem>>, %arg12: memref<16x128xf32, #tpu.memory_space<vmem>>, %arg13: memref<64x128xbf16, #tpu.memory_space<vmem>>, %arg14: memref<1x16x64xbf16, #tpu.memory_space<vmem>>) attributes {dimension_semantics = [#tpu.dimension_semantics<parallel>, #tpu.dimension_semantics<parallel>, #tpu.dimension_semantics<arbitrary>], iteration_bounds = array<i64: 1, 1, 1>, scalar_prefetch = 0 : i64, scratch_operands = 3 : i64, tpu.core_type = #tpu.core_type<tc>, window_params = [{transform_indices = @transform_0, window_bounds = array<i64: 16, 64>}, {pipeline_mode = #tpu.pipeline_mode<synchronous>, transform_indices = @transform_1, window_bounds = array<i64: 1, 64>}, {pipeline_mode = #tpu.pipeline_mode<synchronous>, transform_indices = @transform_2, window_bounds = array<i64: 1, 64>}, {transform_indices = @transform_3, window_bounds = array<i64: 2, 16, 128>}, {transform_indices = @transform_4, window_bounds = array<i64: 2, 1, 128>}, {transform_indices = @transform_5, window_bounds = array<i64: 2, 1, 128>}, {transform_indices = @transform_6, window_bounds = array<i64: 1, 128>}, {transform_indices = @transform_7, window_bounds = array<i64: 16, 64>}, {transform_indices = @transform_8, window_bounds = array<i64: 16, 32>}]} {
    %c0_i32 = arith.constant 0 : i32
    %0 = arith.cmpi eq, %arg2, %c0_i32 : i32
    %1 = arith.extui %0 : i1 to i32
    %c0_i32_0 = arith.constant 0 : i32
    %2 = arith.cmpi ne, %1, %c0_i32_0 : i32
    scf.if %2 {
      %cst_35 = arith.constant 0.000000e+00 : f32
      %68 = vector.broadcast %cst_35 : f32 to vector<16x128xf32>
      %c0_36 = arith.constant 0 : index
      %c0_37 = arith.constant 0 : index
      %69 = vector.load %arg12[%c0_36, %c0_37] : memref<16x128xf32, #tpu.memory_space<vmem>>, vector<16x128xf32>
      tpu.vector_store %arg12[%c0_36, %c0_37], %68 {strides = array<i32>} : memref<16x128xf32, #tpu.memory_space<vmem>>, vector<16x128xf32>,
      %c0_38 = arith.constant 0 : index
      %c0_39 = arith.constant 0 : index
      %70 = vector.load %arg3[%c0_38, %c0_39] : memref<16x64xbf16, #tpu.memory_space<vmem>>, vector<16x64xbf16>
      %71 = arith.extf %70 : vector<16x64xbf16> to vector<16x64xf32>
      %cst_40 = arith.constant dense<0.000000e+00> : vector<16xf32>
      %72 = vector.multi_reduction <add>, %71, %cst_40 [1] : vector<16x64xf32> to vector<16xf32>
      %73 = vector.shape_cast %72 : vector<16xf32> to vector<16x1xf32>
      %cst_41 = arith.constant 6.400000e+01 : f32
      %74 = vector.broadcast %cst_41 : f32 to vector<16x1xf32>
      %75 = arith.divf %73, %74 : vector<16x1xf32>
      %76 = vector.broadcast %75 : vector<16x1xf32> to vector<16x64xf32>
      %77 = arith.subf %71, %76 : vector<16x64xf32>
      %78 = arith.mulf %77, %77 : vector<16x64xf32>
      %cst_42 = arith.constant dense<0.000000e+00> : vector<16xf32>
      %79 = vector.multi_reduction <add>, %78, %cst_42 [1] : vector<16x64xf32> to vector<16xf32>
      %80 = vector.shape_cast %79 : vector<16xf32> to vector<16x1xf32>
      %cst_43 = arith.constant 6.400000e+01 : f32
      %81 = vector.broadcast %cst_43 : f32 to vector<16x1xf32>
      %82 = arith.divf %80, %81 : vector<16x1xf32>
      %cst_44 = arith.constant 9.99999974E-6 : f32
      %83 = vector.broadcast %cst_44 : f32 to vector<16x1xf32>
      %84 = arith.addf %82, %83 : vector<16x1xf32>
      %85 = math.rsqrt %84 : vector<16x1xf32>
      %86 = vector.broadcast %85 : vector<16x1xf32> to vector<16x64xf32>
      %87 = arith.mulf %77, %86 : vector<16x64xf32>
      %c0_45 = arith.constant 0 : index
      %c0_46 = arith.constant 0 : index
      %88 = vector.load %arg4[%c0_45, %c0_46] : memref<1x64xf32, #tpu.memory_space<vmem>>, vector<1x64xf32>
      %89 = vector.broadcast %88 : vector<1x64xf32> to vector<16x64xf32>
      %90 = arith.mulf %87, %89 : vector<16x64xf32>
      %c0_47 = arith.constant 0 : index
      %c0_48 = arith.constant 0 : index
      %91 = vector.load %arg5[%c0_47, %c0_48] : memref<1x64xf32, #tpu.memory_space<vmem>>, vector<1x64xf32>
      %92 = vector.broadcast %91 : vector<1x64xf32> to vector<16x64xf32>
      %93 = arith.addf %90, %92 : vector<16x64xf32>
      %94 = arith.truncf %93 : vector<16x64xf32> to vector<16x64xbf16>
      %c0_49 = arith.constant 0 : index
      %c0_50 = arith.constant 0 : index
      %c0_51 = arith.constant 0 : index
      %95 = vector.load %arg14[%c0_49, %c0_50, %c0_51] : memref<1x16x64xbf16, #tpu.memory_space<vmem>>, vector<1x16x64xbf16>
      %96 = vector.shape_cast %95 : vector<1x16x64xbf16> to vector<16x64xbf16>
      %97 = vector.shape_cast %94 : vector<16x64xbf16> to vector<1x16x64xbf16>
      tpu.vector_store %arg14[%c0_49, %c0_50, %c0_51], %97 {strides = array<i32>} : memref<1x16x64xbf16, #tpu.memory_space<vmem>>, vector<1x16x64xbf16>,
    } else {
    }
    %3 = arith.index_cast %arg2 : i32 to index
    %c0 = arith.constant 0 : index
    %c0_1 = arith.constant 0 : index
    %4 = vector.load %arg14[%3, %c0, %c0_1] : memref<1x16x64xbf16, #tpu.memory_space<vmem>>, vector<1x16x64xbf16>
    %5 = vector.shape_cast %4 : vector<1x16x64xbf16> to vector<16x64xbf16>
    %c0_2 = arith.constant 0 : index
    %c0_3 = arith.constant 0 : index
    %c0_4 = arith.constant 0 : index
    %6 = vector.load %arg6[%c0_2, %c0_3, %c0_4] : memref<2x16x128xi8, #tpu.memory_space<vmem>>, vector<1x16x128xi8>
    %7 = vector.shape_cast %6 : vector<1x16x128xi8> to vector<16x128xi8>
    %8 = arith.extsi %7 : vector<16x128xi8> to vector<16x128xi32>
    %c255_i32 = arith.constant 255 : i32
    %9 = vector.broadcast %c255_i32 : i32 to vector<16x128xi32>
    %10 = arith.andi %8, %9 : vector<16x128xi32>
    %c15_i32 = arith.constant 15 : i32
    %11 = vector.broadcast %c15_i32 : i32 to vector<16x128xi32>
    %12 = arith.andi %10, %11 : vector<16x128xi32>
    %13 = arith.sitofp %12 : vector<16x128xi32> to vector<16x128xf32>
    %c4_i32 = arith.constant 4 : i32
    %14 = vector.broadcast %c4_i32 : i32 to vector<16x128xi32>
    %15 = arith.shrsi %10, %14 : vector<16x128xi32>
    %16 = arith.sitofp %15 : vector<16x128xi32> to vector<16x128xf32>
    %c0_5 = arith.constant 0 : index
    %c0_6 = arith.constant 0 : index
    %c0_7 = arith.constant 0 : index
    %17 = vector.load %arg7[%c0_5, %c0_6, %c0_7] : memref<2x1x128xf32, #tpu.memory_space<vmem>>, vector<1x1x128xf32>
    %18 = vector.shape_cast %17 : vector<1x1x128xf32> to vector<1x128xf32>
    %c0_8 = arith.constant 0 : index
    %c0_9 = arith.constant 0 : index
    %c0_10 = arith.constant 0 : index
    %19 = vector.load %arg8[%c0_8, %c0_9, %c0_10] : memref<2x1x128xf32, #tpu.memory_space<vmem>>, vector<1x1x128xf32>
    %20 = vector.shape_cast %19 : vector<1x1x128xf32> to vector<1x128xf32>
    %21 = vector.broadcast %20 : vector<1x128xf32> to vector<16x128xf32>
    %22 = arith.subf %13, %21 : vector<16x128xf32>
    %23 = vector.broadcast %18 : vector<1x128xf32> to vector<16x128xf32>
    %24 = arith.mulf %22, %23 : vector<16x128xf32>
    %25 = arith.truncf %24 : vector<16x128xf32> to vector<16x128xbf16>
    %c0_11 = arith.constant 0 : index
    %c0_12 = arith.constant 0 : index
    %26 = vector.load %arg13[%c0_11, %c0_12] : memref<64x128xbf16, #tpu.memory_space<vmem>>, vector<16x128xbf16>
    tpu.vector_store %arg13[%c0_11, %c0_12], %25 {strides = array<i32>} : memref<64x128xbf16, #tpu.memory_space<vmem>>, vector<16x128xbf16>,
    %27 = vector.broadcast %20 : vector<1x128xf32> to vector<16x128xf32>
    %28 = arith.subf %16, %27 : vector<16x128xf32>
    %29 = vector.broadcast %18 : vector<1x128xf32> to vector<16x128xf32>
    %30 = arith.mulf %28, %29 : vector<16x128xf32>
    %31 = arith.truncf %30 : vector<16x128xf32> to vector<16x128xbf16>
    %c16 = arith.constant 16 : index
    %c0_13 = arith.constant 0 : index
    %32 = vector.load %arg13[%c16, %c0_13] : memref<64x128xbf16, #tpu.memory_space<vmem>>, vector<16x128xbf16>
    tpu.vector_store %arg13[%c16, %c0_13], %31 {strides = array<i32>} : memref<64x128xbf16, #tpu.memory_space<vmem>>, vector<16x128xbf16>,
    %c1 = arith.constant 1 : index
    %c0_14 = arith.constant 0 : index
    %c0_15 = arith.constant 0 : index
    %33 = vector.load %arg6[%c1, %c0_14, %c0_15] : memref<2x16x128xi8, #tpu.memory_space<vmem>>, vector<1x16x128xi8>
    %34 = vector.shape_cast %33 : vector<1x16x128xi8> to vector<16x128xi8>
    %35 = arith.extsi %34 : vector<16x128xi8> to vector<16x128xi32>
    %c255_i32_16 = arith.constant 255 : i32
    %36 = vector.broadcast %c255_i32_16 : i32 to vector<16x128xi32>
    %37 = arith.andi %35, %36 : vector<16x128xi32>
    %c15_i32_17 = arith.constant 15 : i32
    %38 = vector.broadcast %c15_i32_17 : i32 to vector<16x128xi32>
    %39 = arith.andi %37, %38 : vector<16x128xi32>
    %40 = arith.sitofp %39 : vector<16x128xi32> to vector<16x128xf32>
    %c4_i32_18 = arith.constant 4 : i32
    %41 = vector.broadcast %c4_i32_18 : i32 to vector<16x128xi32>
    %42 = arith.shrsi %37, %41 : vector<16x128xi32>
    %43 = arith.sitofp %42 : vector<16x128xi32> to vector<16x128xf32>
    %c1_19 = arith.constant 1 : index
    %c0_20 = arith.constant 0 : index
    %c0_21 = arith.constant 0 : index
    %44 = vector.load %arg7[%c1_19, %c0_20, %c0_21] : memref<2x1x128xf32, #tpu.memory_space<vmem>>, vector<1x1x128xf32>
    %45 = vector.shape_cast %44 : vector<1x1x128xf32> to vector<1x128xf32>
    %c1_22 = arith.constant 1 : index
    %c0_23 = arith.constant 0 : index
    %c0_24 = arith.constant 0 : index
    %46 = vector.load %arg8[%c1_22, %c0_23, %c0_24] : memref<2x1x128xf32, #tpu.memory_space<vmem>>, vector<1x1x128xf32>
    %47 = vector.shape_cast %46 : vector<1x1x128xf32> to vector<1x128xf32>
    %48 = vector.broadcast %47 : vector<1x128xf32> to vector<16x128xf32>
    %49 = arith.subf %40, %48 : vector<16x128xf32>
    %50 = vector.broadcast %45 : vector<1x128xf32> to vector<16x128xf32>
    %51 = arith.mulf %49, %50 : vector<16x128xf32>
    %52 = arith.truncf %51 : vector<16x128xf32> to vector<16x128xbf16>
    %c32 = arith.constant 32 : index
    %c0_25 = arith.constant 0 : index
    %53 = vector.load %arg13[%c32, %c0_25] : memref<64x128xbf16, #tpu.memory_space<vmem>>, vector<16x128xbf16>
    tpu.vector_store %arg13[%c32, %c0_25], %52 {strides = array<i32>} : memref<64x128xbf16, #tpu.memory_space<vmem>>, vector<16x128xbf16>,
    %54 = vector.broadcast %47 : vector<1x128xf32> to vector<16x128xf32>
    %55 = arith.subf %43, %54 : vector<16x128xf32>
    %56 = vector.broadcast %45 : vector<1x128xf32> to vector<16x128xf32>
    %57 = arith.mulf %55, %56 : vector<16x128xf32>
    %58 = arith.truncf %57 : vector<16x128xf32> to vector<16x128xbf16>
    %c48 = arith.constant 48 : index
    %c0_26 = arith.constant 0 : index
    %59 = vector.load %arg13[%c48, %c0_26] : memref<64x128xbf16, #tpu.memory_space<vmem>>, vector<16x128xbf16>
    tpu.vector_store %arg13[%c48, %c0_26], %58 {strides = array<i32>} : memref<64x128xbf16, #tpu.memory_space<vmem>>, vector<16x128xbf16>,
    %c0_27 = arith.constant 0 : index
    %c0_28 = arith.constant 0 : index
    %60 = vector.load %arg12[%c0_27, %c0_28] : memref<16x128xf32, #tpu.memory_space<vmem>>, vector<16x128xf32>
    %c0_29 = arith.constant 0 : index
    %c0_30 = arith.constant 0 : index
    %61 = vector.load %arg13[%c0_29, %c0_30] : memref<64x128xbf16, #tpu.memory_space<vmem>>, vector<64x128xbf16>
    %cst = arith.constant dense<0.000000e+00> : vector<16x128xf32>
    %62 = tpu.matmul %5, %61, %cst {dimension_numbers = #tpu.dot_dimension_numbers<[1], [0], [0], [1], [0, 0, 1, 1], [], []>} : vector<16x64xbf16>, vector<64x128xbf16>, vector<16x128xf32> -> vector<16x128xf32>
    %63 = arith.addf %60, %62 : vector<16x128xf32>
    %c0_31 = arith.constant 0 : index
    %c0_32 = arith.constant 0 : index
    %64 = vector.load %arg12[%c0_31, %c0_32] : memref<16x128xf32, #tpu.memory_space<vmem>>, vector<16x128xf32>
    tpu.vector_store %arg12[%c0_31, %c0_32], %63 {strides = array<i32>} : memref<16x128xf32, #tpu.memory_space<vmem>>, vector<16x128xf32>,
    %c0_i32_33 = arith.constant 0 : i32
    %65 = arith.cmpi eq, %arg2, %c0_i32_33 : i32
    %66 = arith.extui %65 : i1 to i32
    %c0_i32_34 = arith.constant 0 : i32
    %67 = arith.cmpi ne, %66, %c0_i32_34 : i32
    scf.if %67 {
      %c0_35 = arith.constant 0 : index
      %c0_36 = arith.constant 0 : index
      %68 = vector.load %arg12[%c0_35, %c0_36] : memref<16x128xf32, #tpu.memory_space<vmem>>, vector<16x128xf32>
      %c0_37 = arith.constant 0 : index
      %c0_38 = arith.constant 0 : index
      %69 = vector.load %arg9[%c0_37, %c0_38] : memref<1x128xf32, #tpu.memory_space<vmem>>, vector<1x128xf32>
      %70 = vector.broadcast %69 : vector<1x128xf32> to vector<16x128xf32>
      %71 = arith.addf %68, %70 : vector<16x128xf32>
      %72 = vector.extract_strided_slice %71 {offsets = [0, 0], sizes = [16, 64], strides = [1, 1]} : vector<16x128xf32> to vector<16x64xf32>
      %73 = arith.truncf %72 : vector<16x64xf32> to vector<16x64xbf16>
      %c0_39 = arith.constant 0 : index
      %c0_40 = arith.constant 0 : index
      %74 = vector.load %arg10[%c0_39, %c0_40] : memref<16x64xbf16, #tpu.memory_space<vmem>>, vector<16x64xbf16>
      tpu.vector_store %arg10[%c0_39, %c0_40], %73 {strides = array<i32>} : memref<16x64xbf16, #tpu.memory_space<vmem>>, vector<16x64xbf16>,
      %75 = vector.extract_strided_slice %71 {offsets = [0, 64], sizes = [16, 32], strides = [1, 1]} : vector<16x128xf32> to vector<16x32xf32>
      %76 = arith.truncf %75 : vector<16x32xf32> to vector<16x32xbf16>
      %c0_41 = arith.constant 0 : index
      %c0_42 = arith.constant 0 : index
      %77 = vector.load %arg11[%c0_41, %c0_42] : memref<16x32xbf16, #tpu.memory_space<vmem>>, vector<16x32xbf16>
      tpu.vector_store %arg11[%c0_41, %c0_42], %76 {strides = array<i32>} : memref<16x32xbf16, #tpu.memory_space<vmem>>, vector<16x32xbf16>,
    } else {
    }
    return
  }
  func.func @transform_0(%arg0: i32, %arg1: i32, %arg2: i32) -> (i32, i32) {
    %c0_i32 = arith.constant 0 : i32
    %c0_i32_0 = arith.constant 0 : i32
    return %arg0, %c0_i32 : i32, i32
  }
  func.func @transform_1(%arg0: i32, %arg1: i32, %arg2: i32) -> (i32, i32) {
    %c0_i32 = arith.constant 0 : i32
    %c0_i32_0 = arith.constant 0 : i32
    %c0_i32_1 = arith.constant 0 : i32
    return %c0_i32, %c0_i32_0 : i32, i32
  }
  func.func @transform_2(%arg0: i32, %arg1: i32, %arg2: i32) -> (i32, i32) {
    %c0_i32 = arith.constant 0 : i32
    %c0_i32_0 = arith.constant 0 : i32
    %c0_i32_1 = arith.constant 0 : i32
    return %c0_i32, %c0_i32_0 : i32, i32
  }
  func.func @transform_3(%arg0: i32, %arg1: i32, %arg2: i32) -> (i32, i32, i32) {
    %c0_i32 = arith.constant 0 : i32
    %c0_i32_0 = arith.constant 0 : i32
    return %arg2, %c0_i32, %arg1 : i32, i32, i32
  }
  func.func @transform_4(%arg0: i32, %arg1: i32, %arg2: i32) -> (i32, i32, i32) {
    %c0_i32 = arith.constant 0 : i32
    %c0_i32_0 = arith.constant 0 : i32
    return %arg2, %c0_i32, %arg1 : i32, i32, i32
  }
  func.func @transform_5(%arg0: i32, %arg1: i32, %arg2: i32) -> (i32, i32, i32) {
    %c0_i32 = arith.constant 0 : i32
    %c0_i32_0 = arith.constant 0 : i32
    return %arg2, %c0_i32, %arg1 : i32, i32, i32
  }
  func.func @transform_6(%arg0: i32, %arg1: i32, %arg2: i32) -> (i32, i32) {
    %c0_i32 = arith.constant 0 : i32
    %c0_i32_0 = arith.constant 0 : i32
    return %c0_i32, %arg1 : i32, i32
  }
  func.func @transform_7(%arg0: i32, %arg1: i32, %arg2: i32) -> (i32, i32) {
    %c0_i32 = arith.constant 0 : i32
    %c0_i32_0 = arith.constant 0 : i32
    return %arg0, %c0_i32 : i32, i32
  }
  func.func @transform_8(%arg0: i32, %arg1: i32, %arg2: i32) -> (i32, i32) {
    %c0_i32 = arith.constant 0 : i32
    %c0_i32_0 = arith.constant 0 : i32
    return %arg0, %c0_i32 : i32, i32
  }
}

</mosaic_0001>

<bundles_post_ra>
// kernel: tpu_custom_call.1
= control target key start
LH: loop header
LB: loop body
LE: loop exit
PB: predicated region body
PF: predicated region fallthrough
CT: control target
= control target key end

     0   :  { %14 = vsyncpa [#allocation6], 0  ;;  %s746_s0 = inlined_call_operand.hbm [shape: bf16[16,64], index: 0, kind: input, shape index: {}]   ;;  %s747_s1 = inlined_call_operand.hbm [shape: f32[1,64], index: 1, kind: input, shape index: {}]   ;;  %s748_s2 = inlined_call_operand.hbm [shape: f32[1,64], index: 2, kind: input, shape index: {}]   ;;  %s749_s3 = inlined_call_operand.hbm [shape: s8[2,16,128], index: 3, kind: input, shape index: {}]   ;;  %s750_s4 = inlined_call_operand.vmem [shape: f32[2,1,128], index: 4, kind: input, shape index: {}]   ;;  %s751_s5 = inlined_call_operand.vmem [shape: f32[2,1,128], index: 5, kind: input, shape index: {}]   ;;  %s752_s6 = inlined_call_operand.vmem [shape: f32[1,128], index: 6, kind: input, shape index: {}]   ;;  %s753_s7 = inlined_call_operand.hbm [shape: bf16[16,64], index: 7, kind: output, shape index: {0}]   ;;  %s754_s8 = inlined_call_operand.hbm [shape: bf16[16,32], index: 8, kind: output, shape index: {1}]  }
   0x1   :  { %15 = vsyncpa [#allocation9], 0 }
   0x2   :  { %16 = vsyncpa [#allocation12], 0 }
   0x3   :  { %17 = vsyncpa [#allocation7], 0  ;;  %s37_s29 = sshll.u32 %s747_s1, 4  ;;  %s38_s29 = int_to_ptr.hbm [resolvable:$true] %s37_s29 }
   0x4   :  { %18 = vsyncpa [#allocation15], 0  ;;  %s621_s30 = smov [#allocation8]   ;;  %s23_s12 = sshll.u32 %s746_s0, 4  ;;  %s24_s12 = int_to_ptr.hbm [resolvable:$true] %s23_s12 }
   0x5   :  { %s39_s9 = sshll.u32 %s621_s30, 4  ;;  %s622_s13 = smov [#allocation5]   ;;  %s40_s9 = int_to_ptr.vmem [resolvable:$true] %s39_s9 }
   0x6   :  { %42 = dma.hbm_to_vmem [thread:$0]  %s38_s29, 16, %s40_s9, [#allocation9]  }
   0x7   :  { %s25_s14 = sshll.u32 %s622_s13, 4  ;;  %s623_s15 = smov 64   ;;  %s26_s14 = int_to_ptr.vmem [resolvable:$true] %s25_s14 }
   0x8   :  { %s624_s16 = smov 4   ;;  %s48_s18 = sshll.u32 %s748_s2, 4  ;;  %s49_s18 = int_to_ptr.hbm [resolvable:$true] %s48_s18 }
   0x9   :  { %31 = dma.hbm_to_vmem [thread:$0]  %s24_s12, 128, %s26_s14, [#allocation6], %s623_s15, %s623_s15, %s624_s16  }
   0xa   :  { %s625_s19 = smov [#allocation10]   ;;  %s58_s22 = sshll.u32 %s749_s3, 4  ;;  %s59_s22 = int_to_ptr.hbm [resolvable:$true] %s58_s22 }
   0xb   :  { %s50_s20 = sshll.u32 %s625_s19, 4  ;;  %s626_s23 = smov [#allocation11]   ;;  %s51_s20 = int_to_ptr.vmem [resolvable:$true] %s50_s20 }
   0xc   :  { %53 = dma.hbm_to_vmem [thread:$0]  %s49_s18, 16, %s51_s20, [#allocation9]  }
   0xd   :  { %s60_s24 = sshll.u32 %s626_s23, 4  ;;  %s627_s25 = smov 32   ;;  %s61_s24 = int_to_ptr.vmem [resolvable:$true] %s60_s24 }
   0xe   :  { %s628_s26 = smov 2  }
   0xf   :  { %66 = dma.hbm_to_vmem [thread:$0]  %s59_s22, 128, %s61_s24, [#allocation12], %s627_s25, %s627_s25, %s628_s26  }
  0x10   :  { %611 = dma.done.wait [#allocation6], 128  }
  0x11   :  { %612 = vsyncadd [#allocation6], 4294967168 }
  0x12   :  { %613 = dma.done.wait [#allocation9], 32  }
  0x13   :  { %614 = vsyncadd [#allocation9], 4294967264 }
  0x14   :  { %615 = dma.done.wait [#allocation12], 128  }
  0x15   :  { %616 = vsyncadd [#allocation12], 4294967168  ;;  %v409_v0 = vld [vmem:[#allocation5] sm:$0xff]   ;;  %vm100_vm0 = vcmask 523264   ;;  %v629_v5 = vmov 64.0   ;;  %v440_v22 = vld [vmem:[#allocation11] sm:$0xff]  }
  0x16   :  { %v410_v1 = vunpack.c.l.bf16 %v409_v0  ;;  %v411_v3 = vunpack.c.h.bf16 %v409_v0  ;;  %461 = vrcp.f32 %v629_v5  ;;  %v441_v23 = vunpack.c.2.s8 %v440_v22  ;;  %v456_v31 = vld [vmem:[%s751_s5 + $0x1] ss:$0 sm:$0xff]  ;;  %v458_v52 = vld [vmem:[%s751_s5] ss:$0 sm:$0xff]  ;;  %s630_s11 = smov [#allocation13]   ;;  %s347_s1 = sshll.u32 %s753_s7, 4  ;;  %s348_s1 = int_to_ptr.hbm [resolvable:$true] %s347_s1 }
  0x17   :  { %v442_v24 = vunpack.c.3.s8 %v440_v22  ;;  %v457_v32 = vld [vmem:[%s750_s4 + $0x1] ss:$0 sm:$0xff]  ;;  %v437_v37 = vunpack.c.0.s8 %v440_v22  ;;  %v438_v38 = vunpack.c.1.s8 %v440_v22  ;;  %v459_v56 = vld [vmem:[%s750_s4] ss:$0 sm:$0xff]  ;;  %vm166_vm6 = vcmask 519168   ;;  %s345_s12 = sshll.u32 %s630_s11, 4  ;;  %s346_s12 = int_to_ptr.vmem [resolvable:$true] %s345_s12 }
  0x18   :  { %v101_v2 = vsel %vm100_vm0, %v410_v1, 0.0  ;;  %v104_v4 = vsel %vm100_vm0, %v411_v3, 0.0  ;;  %v217_v25 = vand.u32 255, %v441_v23  ;;  %vm338_vm9 = vcmask 257024   ;;  %s360_s7 = sshll.u32 %s754_s8, 4  ;;  %s361_s7 = int_to_ptr.hbm [resolvable:$true] %s360_s7 }
  0x19   :  { %102 = vadd.xlane.f32.xlu0 %v101_v2  ;;  %v218_v26 = vand.u32 255, %v442_v24  ;;  %v178_v43 = vand.u32 255, %v437_v37  ;;  %v179_v44 = vand.u32 255, %v438_v38 }
  0x1a   :  { %v223_v27 = vshra.s32 %v217_v25, 4  ;;  %v219_v35 = vand.u32 15, %v217_v25 }
  0x1b   :  { %v224_v28 = vshra.s32 %v218_v26, 4  ;;  %v220_v36 = vand.u32 15, %v218_v26  ;;  %v184_v48 = vshra.s32 %v178_v43, 4  ;;  %v185_v49 = vshra.s32 %v179_v44, 4 }
  0x1c   :  { %v462_v6 = vpop.eup %461  ;;  %v225_v29 = vcvt.s32.f32 %v223_v27  ;;  %v221_v41 = vcvt.s32.f32 %v219_v35  ;;  %v180_v57 = vand.u32 15, %v178_v43  ;;  %v181_v58 = vand.u32 15, %v179_v44  ;;  %v460_v43 = vld [vmem:[%s752_s6] ss:$0 sm:$0xff]  ;;  %s631_s6 = smov [#allocation14]  }
  0x1d   :  { %v108_v7 = vmul.f32 64.0, %v462_v6  ;;  %vm112_vm1 = vweird.f32 %v462_v6  ;;  %v226_v30 = vcvt.s32.f32 %v224_v28  ;;  %v222_v42 = vcvt.s32.f32 %v220_v36  ;;  %v454_v28 = vld [vmem:[#allocation8] ss:$0 sm:$0xff]  ;;  %s358_s17 = sshll.u32 %s631_s6, 4  ;;  %s359_s17 = int_to_ptr.vmem [resolvable:$true] %s358_s17 }
  0x1e   :  { %v245_v33 = vsub.f32 %v225_v29, %v456_v31  ;;  %v234_v46 = vsub.f32 %v221_v41, %v456_v31  ;;  %v186_v53 = vcvt.s32.f32 %v184_v48  ;;  %v187_v54 = vcvt.s32.f32 %v185_v49 }
  0x1f   :  { %v109_v8 = vsub.f32 1.0, %v108_v7  ;;  %v246_v34 = vsub.f32 %v226_v30, %v456_v31  ;;  %v235_v47 = vsub.f32 %v222_v42, %v456_v31  ;;  %v182_v61 = vcvt.s32.f32 %v180_v57 }
  0x20   :  { %v247_v39 = vmul.f32 %v457_v32, %v245_v33  ;;  %v239_v50 = vmul.f32 %v457_v32, %v234_v46  ;;  %v204_v59 = vsub.f32 %v186_v53, %v458_v52  ;;  %v205_v60 = vsub.f32 %v187_v54, %v458_v52 }
  0x21   :  { %105 = vadd.xlane.f32.xlu0 %v104_v4  ;;  %v110_v9 = vmul.f32 %v462_v6, %v109_v8  ;;  %v248_v40 = vmul.f32 %v457_v32, %v246_v34  ;;  %v240_v51 = vmul.f32 %v457_v32, %v235_v47  ;;  %v183_v62 = vcvt.s32.f32 %v181_v58 }
  0x22   :  { %v206_v63 = vmul.f32 %v459_v56, %v204_v59  ;;  %v207_v0 = vmul.f32 %v459_v56, %v205_v60 }
  0x23   :  { %v111_v10 = vadd.f32 %v462_v6, %v110_v9  ;;  %v430_v45 = vpack.c.bf16 %v248_v40, %v247_v39  ;;  %v425_v55 = vpack.c.bf16 %v240_v51, %v239_v50  ;;  %v194_v2 = vsub.f32 %v183_v62, %v458_v52 }
  0x24   :  { %v420_v4 = vpack.c.bf16 %v207_v0, %v206_v63 }
  0x25   :  { %v694_v11 = vsel %vm112_vm1, %v462_v6, %v111_v10  ;;  %434 = vst [vmem:[#allocation3 + $0x8] sm:$0xff] %v430_v45   ;;  %v199_v7 = vmul.f32 %v459_v56, %v194_v2 }
  0x26   :  { %433 = vst [vmem:[#allocation3 + $0x18] sm:$0xff] %v425_v55  }
  0x27   :  { %432 = vst [vmem:[#allocation3] sm:$0xff] %v420_v4  }
  0x8c   :  { %v103_v12 = vpop.xlane.xlu0 %102 }
  0x8d   :  { %v114_v13 = vmul.f32 %v694_v11, %v103_v12  ;;  %v406_v12 = vld [vmem:[#allocation3 + $0x18] sm:$0xff] }
  0x8f   :  { %v697_v14 = vsub.f32 %v410_v1, %v114_v13  ;;  %v193_v1 = vsub.f32 %v182_v61, %v458_v52 }
  0x91   :  { %v118_v15 = vmul.f32 %v697_v14, %v697_v14  ;;  %v198_v6 = vmul.f32 %v459_v56, %v193_v1 }
  0x93   :  { %v120_v16 = vsel %vm100_vm0, %v118_v15, 0.0  ;;  %v415_v9 = vpack.c.bf16 %v199_v7, %v198_v6  ;;  %v405_v15 = vld [vmem:[#allocation3] sm:$0xff] }
  0x94   :  { %121 = vadd.xlane.f32.xlu1 %v120_v16  ;;  %v106_v17 = vpop.xlane.xlu0 %105 }
  0x95   :  { %v115_v18 = vmul.f32 %v694_v11, %v106_v17  ;;  %416 = vst [vmem:[#allocation3 + $0x10] sm:$0xff] %v415_v9  }
  0x97   :  { %v703_v19 = vsub.f32 %v411_v3, %v115_v18  ;;  %v407_v3 = vld [vmem:[#allocation3 + $0x8] sm:$0xff] }
  0x98   :  { %300 = vmatpush.bf16.msra.mxu0 %v407_v3 }
  0x99   :  { %v119_v20 = vmul.f32 %v703_v19, %v703_v19 }
  0x9b   :  { %v123_v21 = vsel %vm100_vm0, %v119_v20, 0.0 }
  0x9c   :  { %124 = vadd.xlane.f32.xlu1 %v123_v21  ;;  %301 = vmatpush.bf16.msra.mxu0 %v406_v12  ;;  %v404_v20 = vld [vmem:[#allocation3 + $0x10] sm:$0xff] }
  0xa0   :  { %302 = vmatpush.bf16.msra.mxu0 %v405_v15 }
  0xa4   :  { %303 = vmatpush.bf16.msra.mxu0 %v404_v20 }
 0x107   :  { %v122_v5 = vpop.xlane.xlu1 %121 }
 0x108   :  { %v126_v8 = vmul.f32 %v122_v5, %v694_v11 }
 0x10a   :  { %v128_v10 = vadd.f32 1e-05, %v126_v8 }
 0x10c   :  { %463 = vrsqrt.f32 %v128_v10  ;;  %vm136_vm3 = vweird.f32 %v128_v10 }
 0x10f   :  { %v125_v13 = vpop.xlane.xlu1 %124 }
 0x110   :  { %v127_v16 = vmul.f32 %v125_v13, %v694_v11  ;;  %v455_v11 = vld [vmem:[#allocation10] ss:$0 sm:$0xff] }
 0x112   :  { %v464_v17 = vpop.eup %463  ;;  %v129_v18 = vadd.f32 1e-05, %v127_v16 }
 0x113   :  { %v131_v21 = vmul.f32 %v464_v17, %v128_v10  ;;  %vm137_vm2 = vweird.f32 %v464_v17 }
 0x114   :  { %465 = vrsqrt.f32 %v129_v18  ;;  %vm138_vm4 = vmor %vm136_vm3, %vm137_vm2  ;;  %vm146_vm7 = vweird.f32 %v129_v18 }
 0x115   :  { %v132_v22 = vmul.f32 %v464_v17, %v131_v21 }
 0x117   :  { %v133_v23 = vmul.f32 0.5, %v132_v22 }
 0x119   :  { %v134_v24 = vsub.f32 1.5, %v133_v23 }
 0x11a   :  { %v466_v25 = vpop.eup %465 }
 0x11b   :  { %v135_v26 = vmul.f32 %v464_v17, %v134_v24  ;;  %v141_v27 = vmul.f32 %v466_v25, %v129_v18  ;;  %vm147_vm5 = vweird.f32 %v466_v25 }
 0x11c   :  { %vm148_vm8 = vmor %vm146_vm7, %vm147_vm5 }
 0x11d   :  { %v139_v29 = vsel %vm138_vm4, %v464_v17, %v135_v26  ;;  %v142_v30 = vmul.f32 %v466_v25, %v141_v27 }
 0x11e   :  { %v150_v31 = vmul.f32 %v139_v29, %v697_v14 }
 0x11f   :  { %v143_v32 = vmul.f32 0.5, %v142_v30 }
 0x120   :  { %v156_v33 = vmul.f32 %v454_v28, %v150_v31 }
 0x121   :  { %v144_v34 = vsub.f32 1.5, %v143_v32 }
 0x122   :  { %v162_v35 = vadd.f32 %v455_v11, %v156_v33 }
 0x123   :  { %v145_v36 = vmul.f32 %v466_v25, %v144_v34 }
 0x124   :  { %v164_v37 = vpack.c.bf16 %v162_v35, %v162_v35 }
 0x125   :  { %v149_v38 = vsel %vm148_vm8, %v466_v25, %v145_v36 }
 0x126   :  { %167 = vst.msk [vmem:[#allocation4] sm:$0xf] %vm166_vm6, %v164_v37  ;;  %v151_v39 = vmul.f32 %v149_v38, %v703_v19 }
 0x128   :  { %v157_v40 = vmul.f32 %v454_v28, %v151_v39 }
 0x12a   :  { %v163_v41 = vadd.f32 %v455_v11, %v157_v40 }
 0x12c   :  { %v165_v42 = vpack.c.bf16 %v163_v41, %v163_v41 }
 0x12e   :  { %168 = vst.msk [vmem:[#allocation4 + $0x4] sm:$0xf] %vm166_vm6, %v165_v42 }
 0x135   :  { %v403_v14 = vld [vmem:[#allocation4] sm:$0xff] }
 0x136   :  { %402 = vmatmul.msk.bf16.vlgmr.msra.gmra.mxu0 %vm100_vm0, %v403_v14 }
 0x1b3   :  { %v305_v44 = vpop.f32.mrf.mxu0 }
 0x1b4   :  { %v323_v45 = vadd.f32 %v460_v43, %v305_v44 }
 0x1b6   :  { %v325_v46 = vpack.c.bf16 %v323_v45, %v323_v45 }
 0x1b8   :  { %328 = vst.msk [vmem:[#allocation13] sm:$0xf] %vm166_vm6, %v325_v46  ;;  %332 = vrot.lane.b32.xlu2 %v325_v46, %s623_s15 }
 0x1bb   :  { %v307_v19 = vpop.f32.mrf.mxu0 }
 0x1bc   :  { %v324_v47 = vadd.f32 %v460_v43, %v307_v19 }
 0x1be   :  { %v326_v48 = vpack.c.bf16 %v324_v47, %v324_v47 }
 0x1c0   :  { %329 = vst.msk [vmem:[#allocation13 + $0x4] sm:$0xf] %vm166_vm6, %v326_v48  ;;  %334 = vrot.lane.b32.xlu2 %v326_v48, %s623_s15 }
 0x1c1   :  { %353 = dma.vmem_to_hbm [thread:$0]  %s346_s12, 128, %s348_s1, [#allocation7], %s623_s15, %s623_s15, %s624_s16  }
 0x212   :  { %v333_v49 = vpop.permute.xlu2 %332 }
 0x213   :  { %339 = vst.msk [vmem:[#allocation14] sm:$0xf] %vm338_vm9, %v333_v49 }
 0x21a   :  { %v335_v50 = vpop.permute.xlu2 %334 }
 0x21b   :  { %340 = vst.msk [vmem:[#allocation14 + $0x4] sm:$0xf] %vm338_vm9, %v335_v50 }
 0x21c   :  { %366 = dma.vmem_to_hbm [thread:$0]  %s359_s17, 128, %s361_s7, [#allocation15], %s623_s15, %s623_s15, %s624_s16  }
 0x21d   :  { %617 = dma.done.wait [#allocation7], 128  }
 0x21e   :  { %618 = vsyncadd [#allocation7], 4294967168 }
 0x21f   :  { %619 = dma.done.wait [#allocation15], 128  }
 0x220   :  { %620 = vsyncadd [#allocation15], 4294967168 }
 0x221   :  { %375 = vsyncpa [#allocation6], 1 }
 0x222   :  { %376 = vsyncpa [#allocation9], 1 }
 0x223   :  { %377 = vsyncpa [#allocation12], 1 }
 0x224   :  { %378 = vsyncpa [#allocation7], 1 }
 0x225   :  { %379 = vsyncpa [#allocation15], 1 }

</bundles_post_ra>
